<compile_context>
chip_gen: v5e
topology: v5e:2x2
jax: 0.10.0
libtpu: 0.0.40
codegen_flags: <defaults>
</compile_context>

<pallas_src>
import jax
import jax.numpy as jnp
from jax.experimental import pallas as pl
from jax.experimental.pallas import tpu as pltpu


# -----------------------------------------------------------------------------
# Fused kernel: LSTM recurrence (input projection pre-hoisted) + SoftDotAttention
# + vocab projection.  Everything padded: hidden -> Hp lanes, vocab -> Vp lanes.
# PyTorch gate order: i, f, g, o (each gate occupies its own Hp-wide lane block).
# -----------------------------------------------------------------------------
def _fused_decoder_kernel(gin_ref, h0_ref, c0_ref, whh_ref,
                          ctx_ref, maskadd_ref,
                          win_ref, woutc_ref, wouth_ref, wproj_ref, bproj_ref,
                          logit_ref, h1_ref, c1_ref,
                          x_scr):
    T = gin_ref.shape[0]
    B, Hp = h0_ref.shape
    Vp = logit_ref.shape[2]

    # ---------------- Phase 1: LSTM recurrence (in-kernel loop, grid-free) ----
    def step(t, carry):
        h, c = carry
        gates = gin_ref[t] + jnp.dot(h, whh_ref[...],
                                     preferred_element_type=jnp.float32)     # (B, 4*Hp)
        i_g = jax.nn.sigmoid(gates[:, 0 * Hp:1 * Hp])
        f_g = jax.nn.sigmoid(gates[:, 1 * Hp:2 * Hp])
        g_g = jnp.tanh(gates[:, 2 * Hp:3 * Hp])
        o_g = jax.nn.sigmoid(gates[:, 3 * Hp:4 * Hp])
        c_new = f_g * c + i_g * g_g
        h_new = o_g * jnp.tanh(c_new)
        # Store h_t directly in batch-major (B*T, Hp) layout: row = b*T + t.
        for b in range(B):                       # B is small & static -> unrolled
            x_scr[pl.ds(b * T + t, 1), :] = h_new[b:b + 1, :]
        return h_new, c_new

    h_last, c_last = jax.lax.fori_loop(0, T, step, (h0_ref[...], c0_ref[...]))
    h1_ref[...] = h_last            # written unconditionally (no last-step gating)
    c1_ref[...] = c_last

    # ---------------- Phase 2: SoftDotAttention + projection over all B*T rows ----
    x2 = x_scr[...]                                                    # (B*T, Hp)
    ctx = ctx_ref[...]                                                 # (B, L, Hp)

    # linear_in over all rows at once, then batched scores bmm (flash-attn pattern)
    target = jnp.dot(x2, win_ref[...], preferred_element_type=jnp.float32)    # (B*T, Hp)
    scores = jnp.einsum('bsh,blh->bsl', target.reshape(B, T, Hp), ctx,
                        preferred_element_type=jnp.float32)            # (B, T, L)
    scores = scores + maskadd_ref[...]                                 # additive -1e30 mask

    m = jnp.max(scores, axis=-1, keepdims=True)
    e = jnp.exp(scores - m)
    attn = e * pl.reciprocal(jnp.sum(e, axis=-1, keepdims=True), approx=True)

    weighted = jnp.einsum('bsl,blh->bsh', attn, ctx,
                          preferred_element_type=jnp.float32)          # (B, T, Hp)

    # h_tilde = tanh(linear_out(concat([weighted_ctx, h])))   (W_out split in halves)
    h_tilde = jnp.tanh(
        jnp.dot(weighted.reshape(B * T, Hp), woutc_ref[...],
                preferred_element_type=jnp.float32)
        + jnp.dot(x2, wouth_ref[...], preferred_element_type=jnp.float32))    # (B*T, Hp)

    # logit = projection(h_tilde)   (lane-dense Vp-wide output)
    logit = (jnp.dot(h_tilde, wproj_ref[...], preferred_element_type=jnp.float32)
             + bproj_ref[...])                                         # (B*T, Vp)
    logit_ref[...] = logit.reshape(B, T, Vp)


def _fused_decoder_call(gin, h0p, c0p, whh, ctxp, maskadd,
                        win, woutc, wouth, wproj, bproj):
    T, B, G = gin.shape              # G = 4*Hp
    Hp = h0p.shape[1]
    L = ctxp.shape[1]
    Vp = wproj.shape[1]

    grid_spec = pltpu.PrefetchScalarGridSpec(
        num_scalar_prefetch=0,
        grid=(1,),
        in_specs=[
            pl.BlockSpec((T, B, G), lambda i: (0, 0, 0)),     # hoisted input gates
            pl.BlockSpec((B, Hp), lambda i: (0, 0)),          # h0
            pl.BlockSpec((B, Hp), lambda i: (0, 0)),          # c0
            pl.BlockSpec((Hp, G), lambda i: (0, 0)),          # W_hh (pre-transposed, padded)
            pl.BlockSpec((B, L, Hp), lambda i: (0, 0, 0)),    # ctx (H-padded)
            pl.BlockSpec((B, 1, L), lambda i: (0, 0, 0)),     # additive mask
            pl.BlockSpec((Hp, Hp), lambda i: (0, 0)),         # W_in^T
            pl.BlockSpec((Hp, Hp), lambda i: (0, 0)),         # W_out[:, :H]^T
            pl.BlockSpec((Hp, Hp), lambda i: (0, 0)),         # W_out[:, H:]^T
            pl.BlockSpec((Hp, Vp), lambda i: (0, 0)),         # W_proj^T (V-padded)
            pl.BlockSpec((1, Vp), lambda i: (0, 0)),          # b_proj
        ],
        out_specs=[
            pl.BlockSpec((B, T, Vp), lambda i: (0, 0, 0)),    # logits
            pl.BlockSpec((B, Hp), lambda i: (0, 0)),          # h1
            pl.BlockSpec((B, Hp), lambda i: (0, 0)),          # c1
        ],
        scratch_shapes=[pltpu.VMEM((B * T, Hp), jnp.float32)],
    )
    return pl.pallas_call(
        _fused_decoder_kernel,
        out_shape=(
            jax.ShapeDtypeStruct((B, T, Vp), jnp.float32),
            jax.ShapeDtypeStruct((B, Hp), jnp.float32),
            jax.ShapeDtypeStruct((B, Hp), jnp.float32),
        ),
        grid_spec=grid_spec,
        compiler_params=pltpu.CompilerParams(dimension_semantics=("arbitrary",)),
    )(gin, h0p, c0p, whh, ctxp, maskadd, win, woutc, wouth, wproj, bproj)


# -----------------------------------------------------------------------------
# Full forward (eval mode).  Embedding lookup, the hoisted input projection and
# the zero-padding are cheap one-shot glue in plain XLA.
# -----------------------------------------------------------------------------
def speaker_decoder_forward(words, ctx, ctx_mask, h0, c0, params):
    B, S = words.shape
    H = params["w_ih_T"].shape[1] // 4
    Hp = params["whh_T_pad"].shape[0]
    Vp = params["wproj_T_pad"].shape[1]
    V = params["embedding"].shape[0]

    # inst_embed: embedding lookup (+ dropout == identity in eval)
    embeds = jnp.take(params["embedding"], words, axis=0)              # (B, S, E)

    # Hoisted LSTM input projection: ONE matmul over all T*B rows (parallel, MXU friendly)
    gin = jnp.einsum('bse,ef->bsf', embeds, params["w_ih_T"]) + params["bias"]   # (B, S, 4H)
    gin = jnp.transpose(gin, (1, 0, 2))                                # (S, B, 4H) time-major
    gin = gin.reshape(S, B, 4, H)
    gin = jnp.pad(gin, ((0, 0), (0, 0), (0, 0), (0, Hp - H)))          # pad each gate to Hp
    gin = gin.reshape(S, B, 4 * Hp)

    h0p = jnp.pad(h0[0], ((0, 0), (0, Hp - H)))                        # (B, Hp)
    c0p = jnp.pad(c0[0], ((0, 0), (0, Hp - H)))
    ctxp = jnp.pad(ctx, ((0, 0), (0, 0), (0, Hp - H)))                 # (B, L, Hp)
    maskadd = (ctx_mask.astype(jnp.float32) * jnp.float32(-1e30))[:, None, :]   # (B,1,L)

    logit_p, h1p, c1p = _fused_decoder_call(
        gin, h0p, c0p, params["whh_T_pad"], ctxp, maskadd,
        params["win_T_pad"], params["woutc_T_pad"], params["wouth_T_pad"],
        params["wproj_T_pad"], params["bproj_pad"])

    logit = logit_p[:, :, :V]                                          # drop vocab padding
    h1 = h1p[:, :H][None, :, :]                                        # (1, B, H)
    c1 = c1p[:, :H][None, :, :]
    return logit, h1, c1


def init_params(key, vocab, emb_size, hidden, padding_idx, Hp, Vp):
    ks = jax.random.split(key, 9)
    s = 0.1
    H = hidden
    embedding = jax.random.normal(ks[0], (vocab, emb_size), jnp.float32) * s
    embedding = embedding.at[padding_idx].set(0.0)
    w_ih = jax.random.normal(ks[1], (4 * H, emb_size), jnp.float32) * s
    w_hh = jax.random.normal(ks[2], (4 * H, H), jnp.float32) * s
    b_ih = jax.random.normal(ks[3], (4 * H,), jnp.float32) * s
    b_hh = jax.random.normal(ks[4], (4 * H,), jnp.float32) * s
    w_in = jax.random.normal(ks[5], (H, H), jnp.float32) * s           # linear_in (no bias)
    w_out = jax.random.normal(ks[6], (H, 2 * H), jnp.float32) * s      # linear_out (no bias)
    w_proj = jax.random.normal(ks[7], (vocab, H), jnp.float32) * s
    b_proj = jax.random.normal(ks[8], (vocab,), jnp.float32) * s
    # TODO(synk): baseline_projection params are defined in __init__ but unused in forward().

    def pad2(a, r, c):
        return jnp.pad(a, ((0, r - a.shape[0]), (0, c - a.shape[1])))

    # Pre-transpose + zero-pad once (kernel never transposes; padded rows/cols are zero
    # so the extra lanes stay exactly 0 through the whole forward pass).
    whh_T = w_hh.T.reshape(H, 4, H)                                    # (H_in, gate, H_out)
    whh_T_pad = jnp.pad(whh_T, ((0, Hp - H), (0, 0), (0, Hp - H))).reshape(Hp, 4 * Hp)

    return dict(
        embedding=embedding,
        w_ih_T=w_ih.T,                                                 # (E, 4H) for hoisted matmul
        bias=(b_ih + b_hh),                                            # (4H,)
        whh_T_pad=whh_T_pad,                                           # (Hp, 4*Hp)
        win_T_pad=pad2(w_in.T, Hp, Hp),
        woutc_T_pad=pad2(w_out[:, :H].T, Hp, Hp),                      # weighted-ctx half
        wouth_T_pad=pad2(w_out[:, H:].T, Hp, Hp),                      # hidden half
        wproj_T_pad=pad2(w_proj.T, Hp, Vp),
        bproj_pad=jnp.pad(b_proj, (0, Vp - vocab))[None, :],           # (1, Vp)
    )


if __name__ == "__main__":
    B, S, L = 2, 8, 8            # batch, decode length, context length
    V, E, H = 40, 32, 32         # vocab, embedding, hidden
    PAD = 0
    Hp, Vp = 128, 128            # lane-padded hidden / vocab (multiples of 128)

    key = jax.random.PRNGKey(0)
    kp, kw, kc, kh, kcc = jax.random.split(key, 5)

    params = init_params(kp, V, E, H, PAD, Hp, Vp)

    words = jax.random.randint(kw, (B, S), 1, V, dtype=jnp.int32)
    ctx = jax.random.normal(kc, (B, L, H), jnp.float32)
    lengths = jnp.array([6, 8], dtype=jnp.int32)
    ctx_mask = (jnp.arange(L)[None, :] >= lengths[:, None]).astype(jnp.float32)  # 1.0 = masked
    h0 = jax.random.normal(kh, (1, B, H), jnp.float32) * 0.1
    c0 = jax.random.normal(kcc, (1, B, H), jnp.float32) * 0.1

    fwd = jax.jit(speaker_decoder_forward)
    logit, h1, c1 = fwd(words, ctx, ctx_mask, h0, c0, params)
    jax.block_until_ready((logit, h1, c1))

    assert logit.shape == (B, S, V)
    assert h1.shape == (1, B, H) and c1.shape == (1, B, H)
    assert bool(jnp.all(jnp.isfinite(logit)))
    print("KERNEL_OK")
</pallas_src>

<mosaic_0001>
module attributes {stable_mosaic.version = 11 : i64} {
  func.func @_fused_decoder_kernel(%arg0: i32, %arg1: memref<8x2x512xf32, #tpu.memory_space<vmem>>, %arg2: memref<2x128xf32, #tpu.memory_space<vmem>>, %arg3: memref<2x128xf32, #tpu.memory_space<vmem>>, %arg4: memref<128x512xf32, #tpu.memory_space<vmem>>, %arg5: memref<2x8x128xf32, #tpu.memory_space<vmem>>, %arg6: memref<2x1x8xf32, #tpu.memory_space<vmem>>, %arg7: memref<128x128xf32, #tpu.memory_space<vmem>>, %arg8: memref<128x128xf32, #tpu.memory_space<vmem>>, %arg9: memref<128x128xf32, #tpu.memory_space<vmem>>, %arg10: memref<128x128xf32, #tpu.memory_space<vmem>>, %arg11: memref<1x128xf32, #tpu.memory_space<vmem>>, %arg12: memref<2x8x128xf32, #tpu.memory_space<vmem>>, %arg13: memref<2x128xf32, #tpu.memory_space<vmem>>, %arg14: memref<2x128xf32, #tpu.memory_space<vmem>>, %arg15: memref<16x128xf32, #tpu.memory_space<vmem>>) attributes {dimension_semantics = [#tpu.dimension_semantics<arbitrary>], iteration_bounds = array<i64: 1>, scalar_prefetch = 0 : i64, scratch_operands = 1 : i64, tpu.core_type = #tpu.core_type<tc>, window_params = [{pipeline_mode = #tpu.pipeline_mode<synchronous>, transform_indices = @transform_0, window_bounds = array<i64: 8, 2, 512>}, {pipeline_mode = #tpu.pipeline_mode<synchronous>, transform_indices = @transform_1, window_bounds = array<i64: 2, 128>}, {pipeline_mode = #tpu.pipeline_mode<synchronous>, transform_indices = @transform_2, window_bounds = array<i64: 2, 128>}, {pipeline_mode = #tpu.pipeline_mode<synchronous>, transform_indices = @transform_3, window_bounds = array<i64: 128, 512>}, {pipeline_mode = #tpu.pipeline_mode<synchronous>, transform_indices = @transform_4, window_bounds = array<i64: 2, 8, 128>}, {pipeline_mode = #tpu.pipeline_mode<synchronous>, transform_indices = @transform_5, window_bounds = array<i64: 2, 1, 8>}, {pipeline_mode = #tpu.pipeline_mode<synchronous>, transform_indices = @transform_6, window_bounds = array<i64: 128, 128>}, {pipeline_mode = #tpu.pipeline_mode<synchronous>, transform_indices = @transform_7, window_bounds = array<i64: 128, 128>}, {pipeline_mode = #tpu.pipeline_mode<synchronous>, transform_indices = @transform_8, window_bounds = array<i64: 128, 128>}, {pipeline_mode = #tpu.pipeline_mode<synchronous>, transform_indices = @transform_9, window_bounds = array<i64: 128, 128>}, {pipeline_mode = #tpu.pipeline_mode<synchronous>, transform_indices = @transform_10, window_bounds = array<i64: 1, 128>}, {pipeline_mode = #tpu.pipeline_mode<synchronous>, transform_indices = @transform_11, window_bounds = array<i64: 2, 8, 128>}, {pipeline_mode = #tpu.pipeline_mode<synchronous>, transform_indices = @transform_12, window_bounds = array<i64: 2, 128>}, {pipeline_mode = #tpu.pipeline_mode<synchronous>, transform_indices = @transform_13, window_bounds = array<i64: 2, 128>}]} {
    %c0 = arith.constant 0 : index
    %c0_0 = arith.constant 0 : index
    %0 = vector.load %arg2[%c0, %c0_0] : memref<2x128xf32, #tpu.memory_space<vmem>>, vector<2x128xf32>
    %c0_1 = arith.constant 0 : index
    %c0_2 = arith.constant 0 : index
    %1 = vector.load %arg3[%c0_1, %c0_2] : memref<2x128xf32, #tpu.memory_space<vmem>>, vector<2x128xf32>
    %c0_i32 = arith.constant 0 : i32
    %c8_i32 = arith.constant 8 : i32
    %2 = arith.addi %c0_i32, %c8_i32 : i32
    %c1_i32 = arith.constant 1 : i32
    %3:2 = scf.for %arg16 = %c0_i32 to %2 step %c1_i32 iter_args(%arg17 = %0, %arg18 = %1) -> (vector<2x128xf32>, vector<2x128xf32>)  : i32 {
      %40 = arith.index_cast %arg16 : i32 to index
      %c0_36 = arith.constant 0 : index
      %c0_37 = arith.constant 0 : index
      %41 = vector.load %arg1[%40, %c0_36, %c0_37] : memref<8x2x512xf32, #tpu.memory_space<vmem>>, vector<1x2x512xf32>
      %42 = vector.shape_cast %41 : vector<1x2x512xf32> to vector<2x512xf32>
      %c0_38 = arith.constant 0 : index
      %c0_39 = arith.constant 0 : index
      %43 = vector.load %arg4[%c0_38, %c0_39] : memref<128x512xf32, #tpu.memory_space<vmem>>, vector<128x512xf32>
      %cst_40 = arith.constant dense<0.000000e+00> : vector<2x512xf32>
      %44 = tpu.matmul %arg17, %43, %cst_40 {dimension_numbers = #tpu.dot_dimension_numbers<[1], [0], [0], [1], [0, 0, 1, 1], [], []>} : vector<2x128xf32>, vector<128x512xf32>, vector<2x512xf32> -> vector<2x512xf32>
      %45 = arith.addf %42, %44 : vector<2x512xf32>
      %46 = vector.extract_strided_slice %45 {offsets = [0, 0], sizes = [2, 128], strides = [1, 1]} : vector<2x512xf32> to vector<2x128xf32>
      %47 = arith.negf %46 : vector<2x128xf32>
      %48 = math.exp %47 : vector<2x128xf32>
      %cst_41 = arith.constant 1.000000e+00 : f32
      %49 = vector.broadcast %cst_41 : f32 to vector<2x128xf32>
      %50 = arith.addf %49, %48 : vector<2x128xf32>
      %51 = arith.divf %49, %50 : vector<2x128xf32>
      %52 = vector.extract_strided_slice %45 {offsets = [0, 128], sizes = [2, 128], strides = [1, 1]} : vector<2x512xf32> to vector<2x128xf32>
      %53 = arith.negf %52 : vector<2x128xf32>
      %54 = math.exp %53 : vector<2x128xf32>
      %cst_42 = arith.constant 1.000000e+00 : f32
      %55 = vector.broadcast %cst_42 : f32 to vector<2x128xf32>
      %56 = arith.addf %55, %54 : vector<2x128xf32>
      %57 = arith.divf %55, %56 : vector<2x128xf32>
      %58 = vector.extract_strided_slice %45 {offsets = [0, 256], sizes = [2, 128], strides = [1, 1]} : vector<2x512xf32> to vector<2x128xf32>
      %59 = math.tanh %58 : vector<2x128xf32>
      %60 = vector.extract_strided_slice %45 {offsets = [0, 384], sizes = [2, 128], strides = [1, 1]} : vector<2x512xf32> to vector<2x128xf32>
      %61 = arith.negf %60 : vector<2x128xf32>
      %62 = math.exp %61 : vector<2x128xf32>
      %cst_43 = arith.constant 1.000000e+00 : f32
      %63 = vector.broadcast %cst_43 : f32 to vector<2x128xf32>
      %64 = arith.addf %63, %62 : vector<2x128xf32>
      %65 = arith.divf %63, %64 : vector<2x128xf32>
      %66 = arith.mulf %57, %arg18 : vector<2x128xf32>
      %67 = arith.mulf %51, %59 : vector<2x128xf32>
      %68 = arith.addf %66, %67 : vector<2x128xf32>
      %69 = math.tanh %68 : vector<2x128xf32>
      %70 = arith.mulf %65, %69 : vector<2x128xf32>
      %71 = vector.extract_strided_slice %70 {offsets = [0, 0], sizes = [1, 128], strides = [1, 1]} : vector<2x128xf32> to vector<1x128xf32>
      %c0_i32_44 = arith.constant 0 : i32
      %72 = arith.addi %c0_i32_44, %arg16 : i32
      %73 = arith.index_cast %72 : i32 to index
      %c0_45 = arith.constant 0 : index
      %74 = vector.load %arg15[%73, %c0_45] : memref<16x128xf32, #tpu.memory_space<vmem>>, vector<1x128xf32>
      tpu.vector_store %arg15[%73, %c0_45], %71 {strides = array<i32>} : memref<16x128xf32, #tpu.memory_space<vmem>>, vector<1x128xf32>,
      %75 = vector.extract_strided_slice %70 {offsets = [1, 0], sizes = [1, 128], strides = [1, 1]} : vector<2x128xf32> to vector<1x128xf32>
      %c8_i32_46 = arith.constant 8 : i32
      %76 = arith.addi %c8_i32_46, %arg16 : i32
      %77 = arith.index_cast %76 : i32 to index
      %c0_47 = arith.constant 0 : index
      %78 = vector.load %arg15[%77, %c0_47] : memref<16x128xf32, #tpu.memory_space<vmem>>, vector<1x128xf32>
      tpu.vector_store %arg15[%77, %c0_47], %75 {strides = array<i32>} : memref<16x128xf32, #tpu.memory_space<vmem>>, vector<1x128xf32>,
      scf.yield %70, %68 : vector<2x128xf32>, vector<2x128xf32>
    }
    %c8_i32_3 = arith.constant 8 : i32
    %c0_4 = arith.constant 0 : index
    %c0_5 = arith.constant 0 : index
    %4 = vector.load %arg13[%c0_4, %c0_5] : memref<2x128xf32, #tpu.memory_space<vmem>>, vector<2x128xf32>
    tpu.vector_store %arg13[%c0_4, %c0_5], %3#0 {strides = array<i32>} : memref<2x128xf32, #tpu.memory_space<vmem>>, vector<2x128xf32>,
    %c0_6 = arith.constant 0 : index
    %c0_7 = arith.constant 0 : index
    %5 = vector.load %arg14[%c0_6, %c0_7] : memref<2x128xf32, #tpu.memory_space<vmem>>, vector<2x128xf32>
    tpu.vector_store %arg14[%c0_6, %c0_7], %3#1 {strides = array<i32>} : memref<2x128xf32, #tpu.memory_space<vmem>>, vector<2x128xf32>,
    %c0_8 = arith.constant 0 : index
    %c0_9 = arith.constant 0 : index
    %6 = vector.load %arg15[%c0_8, %c0_9] : memref<16x128xf32, #tpu.memory_space<vmem>>, vector<16x128xf32>
    %c0_10 = arith.constant 0 : index
    %c0_11 = arith.constant 0 : index
    %c0_12 = arith.constant 0 : index
    %7 = vector.load %arg5[%c0_10, %c0_11, %c0_12] : memref<2x8x128xf32, #tpu.memory_space<vmem>>, vector<2x8x128xf32>
    %c0_13 = arith.constant 0 : index
    %c0_14 = arith.constant 0 : index
    %8 = vector.load %arg7[%c0_13, %c0_14] : memref<128x128xf32, #tpu.memory_space<vmem>>, vector<128x128xf32>
    %cst = arith.constant dense<0.000000e+00> : vector<16x128xf32>
    %9 = tpu.matmul %6, %8, %cst {dimension_numbers = #tpu.dot_dimension_numbers<[1], [0], [0], [1], [0, 0, 1, 1], [], []>} : vector<16x128xf32>, vector<128x128xf32>, vector<16x128xf32> -> vector<16x128xf32>
    %10 = vector.shape_cast %9 : vector<16x128xf32> to vector<2x8x128xf32>
    "tpu.trace_start"() <{level = 10 : i32, message = "bsh,blh->bsl"}> : () -> ()
    %cst_15 = arith.constant dense<0.000000e+00> : vector<2x8x8xf32>
    %11 = tpu.matmul %10, %7, %cst_15 {dimension_numbers = #tpu.dot_dimension_numbers<[2], [2], [1], [1], [0, 0, 0, 1, 1, 1], [0], [0]>} : vector<2x8x128xf32>, vector<2x8x128xf32>, vector<2x8x8xf32> -> vector<2x8x8xf32>
    "tpu.trace_stop"() : () -> ()
    %c0_16 = arith.constant 0 : index
    %c0_17 = arith.constant 0 : index
    %c0_18 = arith.constant 0 : index
    %12 = vector.load %arg6[%c0_16, %c0_17, %c0_18] : memref<2x1x8xf32, #tpu.memory_space<vmem>>, vector<2x1x8xf32>
    %13 = vector.broadcast %12 : vector<2x1x8xf32> to vector<2x8x8xf32>
    %14 = arith.addf %11, %13 : vector<2x8x8xf32>
    %cst_19 = arith.constant dense<0xFF800000> : vector<2x8xf32>
    %15 = vector.multi_reduction <maximumf>, %14, %cst_19 [2] : vector<2x8x8xf32> to vector<2x8xf32>
    %16 = vector.shape_cast %15 : vector<2x8xf32> to vector<2x8x1xf32>
    %17 = vector.broadcast %16 : vector<2x8x1xf32> to vector<2x8x8xf32>
    %18 = arith.subf %14, %17 : vector<2x8x8xf32>
    %19 = math.exp %18 : vector<2x8x8xf32>
    %cst_20 = arith.constant dense<0.000000e+00> : vector<2x8xf32>
    %20 = vector.multi_reduction <add>, %19, %cst_20 [2] : vector<2x8x8xf32> to vector<2x8xf32>
    %21 = vector.shape_cast %20 : vector<2x8xf32> to vector<2x8x1xf32>
    %22 = tpu.reciprocal %21 {approx = true} : vector<2x8x1xf32> -> vector<2x8x1xf32>
    %23 = vector.broadcast %22 : vector<2x8x1xf32> to vector<2x8x8xf32>
    %24 = arith.mulf %19, %23 : vector<2x8x8xf32>
    "tpu.trace_start"() <{level = 10 : i32, message = "bsl,blh->bsh"}> : () -> ()
    %cst_21 = arith.constant dense<0.000000e+00> : vector<2x8x128xf32>
    %25 = tpu.matmul %24, %7, %cst_21 {dimension_numbers = #tpu.dot_dimension_numbers<[2], [1], [1], [2], [0, 0, 0, 1, 1, 2], [0], [0]>} : vector<2x8x8xf32>, vector<2x8x128xf32>, vector<2x8x128xf32> -> vector<2x8x128xf32>
    "tpu.trace_stop"() : () -> ()
    %26 = vector.shape_cast %25 : vector<2x8x128xf32> to vector<16x128xf32>
    %c0_22 = arith.constant 0 : index
    %c0_23 = arith.constant 0 : index
    %27 = vector.load %arg8[%c0_22, %c0_23] : memref<128x128xf32, #tpu.memory_space<vmem>>, vector<128x128xf32>
    %cst_24 = arith.constant dense<0.000000e+00> : vector<16x128xf32>
    %28 = tpu.matmul %26, %27, %cst_24 {dimension_numbers = #tpu.dot_dimension_numbers<[1], [0], [0], [1], [0, 0, 1, 1], [], []>} : vector<16x128xf32>, vector<128x128xf32>, vector<16x128xf32> -> vector<16x128xf32>
    %c0_25 = arith.constant 0 : index
    %c0_26 = arith.constant 0 : index
    %29 = vector.load %arg9[%c0_25, %c0_26] : memref<128x128xf32, #tpu.memory_space<vmem>>, vector<128x128xf32>
    %cst_27 = arith.constant dense<0.000000e+00> : vector<16x128xf32>
    %30 = tpu.matmul %6, %29, %cst_27 {dimension_numbers = #tpu.dot_dimension_numbers<[1], [0], [0], [1], [0, 0, 1, 1], [], []>} : vector<16x128xf32>, vector<128x128xf32>, vector<16x128xf32> -> vector<16x128xf32>
    %31 = arith.addf %28, %30 : vector<16x128xf32>
    %32 = math.tanh %31 : vector<16x128xf32>
    %c0_28 = arith.constant 0 : index
    %c0_29 = arith.constant 0 : index
    %33 = vector.load %arg10[%c0_28, %c0_29] : memref<128x128xf32, #tpu.memory_space<vmem>>, vector<128x128xf32>
    %cst_30 = arith.constant dense<0.000000e+00> : vector<16x128xf32>
    %34 = tpu.matmul %32, %33, %cst_30 {dimension_numbers = #tpu.dot_dimension_numbers<[1], [0], [0], [1], [0, 0, 1, 1], [], []>} : vector<16x128xf32>, vector<128x128xf32>, vector<16x128xf32> -> vector<16x128xf32>
    %c0_31 = arith.constant 0 : index
    %c0_32 = arith.constant 0 : index
    %35 = vector.load %arg11[%c0_31, %c0_32] : memref<1x128xf32, #tpu.memory_space<vmem>>, vector<1x128xf32>
    %36 = vector.broadcast %35 : vector<1x128xf32> to vector<16x128xf32>
    %37 = arith.addf %34, %36 : vector<16x128xf32>
    %38 = vector.shape_cast %37 : vector<16x128xf32> to vector<2x8x128xf32>
    %c0_33 = arith.constant 0 : index
    %c0_34 = arith.constant 0 : index
    %c0_35 = arith.constant 0 : index
    %39 = vector.load %arg12[%c0_33, %c0_34, %c0_35] : memref<2x8x128xf32, #tpu.memory_space<vmem>>, vector<2x8x128xf32>
    tpu.vector_store %arg12[%c0_33, %c0_34, %c0_35], %38 {strides = array<i32>} : memref<2x8x128xf32, #tpu.memory_space<vmem>>, vector<2x8x128xf32>,
    return
  }
  func.func @transform_0(%arg0: i32) -> (i32, i32, i32) {
    %c0_i32 = arith.constant 0 : i32
    %c0_i32_0 = arith.constant 0 : i32
    %c0_i32_1 = arith.constant 0 : i32
    %c0_i32_2 = arith.constant 0 : i32
    return %c0_i32, %c0_i32_0, %c0_i32_1 : i32, i32, i32
  }
  func.func @transform_1(%arg0: i32) -> (i32, i32) {
    %c0_i32 = arith.constant 0 : i32
    %c0_i32_0 = arith.constant 0 : i32
    %c0_i32_1 = arith.constant 0 : i32
    return %c0_i32, %c0_i32_0 : i32, i32
  }
  func.func @transform_2(%arg0: i32) -> (i32, i32) {
    %c0_i32 = arith.constant 0 : i32
    %c0_i32_0 = arith.constant 0 : i32
    %c0_i32_1 = arith.constant 0 : i32
    return %c0_i32, %c0_i32_0 : i32, i32
  }
  func.func @transform_3(%arg0: i32) -> (i32, i32) {
    %c0_i32 = arith.constant 0 : i32
    %c0_i32_0 = arith.constant 0 : i32
    %c0_i32_1 = arith.constant 0 : i32
    return %c0_i32, %c0_i32_0 : i32, i32
  }
  func.func @transform_4(%arg0: i32) -> (i32, i32, i32) {
    %c0_i32 = arith.constant 0 : i32
    %c0_i32_0 = arith.constant 0 : i32
    %c0_i32_1 = arith.constant 0 : i32
    %c0_i32_2 = arith.constant 0 : i32
    return %c0_i32, %c0_i32_0, %c0_i32_1 : i32, i32, i32
  }
  func.func @transform_5(%arg0: i32) -> (i32, i32, i32) {
    %c0_i32 = arith.constant 0 : i32
    %c0_i32_0 = arith.constant 0 : i32
    %c0_i32_1 = arith.constant 0 : i32
    %c0_i32_2 = arith.constant 0 : i32
    return %c0_i32, %c0_i32_0, %c0_i32_1 : i32, i32, i32
  }
  func.func @transform_6(%arg0: i32) -> (i32, i32) {
    %c0_i32 = arith.constant 0 : i32
    %c0_i32_0 = arith.constant 0 : i32
    %c0_i32_1 = arith.constant 0 : i32
    return %c0_i32, %c0_i32_0 : i32, i32
  }
  func.func @transform_7(%arg0: i32) -> (i32, i32) {
    %c0_i32 = arith.constant 0 : i32
    %c0_i32_0 = arith.constant 0 : i32
    %c0_i32_1 = arith.constant 0 : i32
    return %c0_i32, %c0_i32_0 : i32, i32
  }
  func.func @transform_8(%arg0: i32) -> (i32, i32) {
    %c0_i32 = arith.constant 0 : i32
    %c0_i32_0 = arith.constant 0 : i32
    %c0_i32_1 = arith.constant 0 : i32
    return %c0_i32, %c0_i32_0 : i32, i32
  }
  func.func @transform_9(%arg0: i32) -> (i32, i32) {
    %c0_i32 = arith.constant 0 : i32
    %c0_i32_0 = arith.constant 0 : i32
    %c0_i32_1 = arith.constant 0 : i32
    return %c0_i32, %c0_i32_0 : i32, i32
  }
  func.func @transform_10(%arg0: i32) -> (i32, i32) {
    %c0_i32 = arith.constant 0 : i32
    %c0_i32_0 = arith.constant 0 : i32
    %c0_i32_1 = arith.constant 0 : i32
    return %c0_i32, %c0_i32_0 : i32, i32
  }
  func.func @transform_11(%arg0: i32) -> (i32, i32, i32) {
    %c0_i32 = arith.constant 0 : i32
    %c0_i32_0 = arith.constant 0 : i32
    %c0_i32_1 = arith.constant 0 : i32
    %c0_i32_2 = arith.constant 0 : i32
    return %c0_i32, %c0_i32_0, %c0_i32_1 : i32, i32, i32
  }
  func.func @transform_12(%arg0: i32) -> (i32, i32) {
    %c0_i32 = arith.constant 0 : i32
    %c0_i32_0 = arith.constant 0 : i32
    %c0_i32_1 = arith.constant 0 : i32
    return %c0_i32, %c0_i32_0 : i32, i32
  }
  func.func @transform_13(%arg0: i32) -> (i32, i32) {
    %c0_i32 = arith.constant 0 : i32
    %c0_i32_0 = arith.constant 0 : i32
    %c0_i32_1 = arith.constant 0 : i32
    return %c0_i32, %c0_i32_0 : i32, i32
  }
}

</mosaic_0001>

<bundles_post_ra>
// kernel: speaker_decoder_forward.1
= control target key start
LH: loop header
LB: loop body
LE: loop exit
PB: predicated region body
PF: predicated region fallthrough
CT: control target
= control target key end

     0   :  { %19 = vsyncpa [#allocation4], 0  ;;  %s1133_s0 = inlined_call_operand.vmem [shape: f32[8,2,512], index: 0, kind: input, shape index: {}]   ;;  %s1134_s1 = inlined_call_operand.vmem [shape: f32[2,128], index: 1, kind: input, shape index: {}]   ;;  %s1135_s2 = inlined_call_operand.vmem [shape: f32[2,128], index: 2, kind: input, shape index: {}]   ;;  %s1136_s3 = inlined_call_operand.hbm [shape: f32[128,512], index: 3, kind: input, shape index: {}]   ;;  %s1137_s4 = inlined_call_operand.vmem [shape: f32[2,8,128], index: 4, kind: input, shape index: {}]   ;;  %s1138_s5 = inlined_call_operand.vmem [shape: f32[2,1,8], index: 5, kind: input, shape index: {}]   ;;  %s1139_s6 = inlined_call_operand.vmem [shape: f32[128,128], index: 6, kind: input, shape index: {}]   ;;  %s1140_s7 = inlined_call_operand.vmem [shape: f32[128,128], index: 7, kind: input, shape index: {}]   ;;  %s1141_s8 = inlined_call_operand.vmem [shape: f32[128,128], index: 8, kind: input, shape index: {}]   ;;  %s1142_s9 = inlined_call_operand.vmem [shape: f32[128,128], index: 9, kind: input, shape index: {}]   ;;  %s1143_s10 = inlined_call_operand.vmem [shape: f32[1,128], index: 10, kind: input, shape index: {}]   ;;  %s1144_s11 = inlined_call_operand.hbm [shape: f32[2,8,128], index: 11, kind: output, shape index: {0}]   ;;  %s1145_s12 = inlined_call_operand.vmem [shape: f32[2,128], index: 12, kind: output, shape index: {1}]   ;;  %s1146_s13 = inlined_call_operand.vmem [shape: f32[2,128], index: 13, kind: output, shape index: {2}]  }
   0x1   :  { %20 = vsyncpa [#allocation5], 0  ;;  %s31_s27 = sshll.u32 %s1136_s3, 4  ;;  %s782_s28 = smov [#allocation3]   ;;  %s32_s27 = int_to_ptr.hbm [resolvable:$true] %s31_s27 }
   0x2   :  { %s33_s29 = sshll.u32 %s782_s28, 4  ;;  %s783_s30 = smov 512   ;;  %s34_s29 = int_to_ptr.vmem [resolvable:$true] %s33_s29 }
   0x3   :  { %s784_s14 = smov 32  }
   0x4   :  { %39 = dma.hbm_to_vmem [thread:$0]  %s32_s27, 8192, %s34_s29, [#allocation4], %s783_s30, %s783_s30, %s784_s14  }
   0x5   :  { %766 = dma.done.wait [#allocation4], 8192  }
   0x6   :  { %767 = vsyncadd [#allocation4], 4294959104  ;;  %v58_v0 = vld [vmem:[%s1134_s1] sm:$0x3]   ;;  %s871_s3 = smov 0  }
   0x7   :  { %v59_v1 = vld [vmem:[%s1135_s2] sm:$0x3]  }
   0x8 LB: > { %v134_v2 = vld [vmem:[#allocation3 + $0x1f0] sm:$0xff]  ;;  %v135_v3 = vld [vmem:[#allocation3 + $0x1f8] sm:$0xff]  ;;  %v133_v8 = vld [vmem:[#allocation3 + $0x1e8] sm:$0xff]  ;;  %s644_s1 = sshll.u32 %s780_s3, 3  ;;  %vm223_vm0 = vcmask 1041408   ;;  %vm225_vm1 = vcmask 1045508   ;;  %s780_s3 = sphi %s871_s3, %s65_s3   ;;  %v776_v0 = vphi %v58_v0, %v1148_v0   ;;  %v772_v1 = vphi %v59_v1, %v1147_v1  }
   0x9   : > { %v130_v4 = vld [vmem:[#allocation3 + $0x1d0] sm:$0xff]  ;;  %176 = vmatpush.msra.mxu2 %v134_v2  ;;  %196 = vmatpush.msra.mxu3 %v135_v3  ;;  %v131_v5 = vld [vmem:[#allocation3 + $0x1d8] sm:$0xff]  ;;  %v132_v9 = vld [vmem:[#allocation3 + $0x1e0] sm:$0xff]  ;;  %s70_s20 = scalar_lea.vmem %s1133_s0, %s644_s1  ;;  %vm227_vm2 = vcmask 1043456   ;;  %s301_s21 = scalar_lea.vmem [#allocation2], %s780_s3 }
   0xa   : > { %v126_v6 = vld [vmem:[#allocation3 + $0x1b0] sm:$0xff]  ;;  %v127_v7 = vld [vmem:[#allocation3 + $0x1b8] sm:$0xff]  ;;  %v129_v10 = vld [vmem:[#allocation3 + $0x1c8] sm:$0xff]  ;;  %156 = vmatpush.msra.mxu1 %v133_v8  ;;  %136 = vmatpush.msra.mxu0 %v132_v9  ;;  %s65_s3 = sadd.s32 1, %s780_s3  }
   0xb   : > { %177 = vmatpush.msra.mxu2 %v130_v4  ;;  %197 = vmatpush.msra.mxu3 %v131_v5  ;;  %v122_v11 = vld [vmem:[#allocation3 + $0x190] sm:$0xff]  ;;  %v123_v12 = vld [vmem:[#allocation3 + $0x198] sm:$0xff]  ;;  %v128_v13 = vld [vmem:[#allocation3 + $0x1c0] sm:$0xff]  ;;  %p62_p0 = scmp.ge.s32.totalorder %s65_s3, 8  }
   0xc   : > { %v125_v14 = vld [vmem:[#allocation3 + $0x1a8] sm:$0xff]  ;;  %v124_v15 = vld [vmem:[#allocation3 + $0x1a0] sm:$0xff]  ;;  %157 = vmatpush.msra.mxu1 %v129_v10  ;;  %v118_v16 = vld [vmem:[#allocation3 + $0x170] sm:$0xff]  ;;  %137 = vmatpush.msra.mxu0 %v128_v13  ;;  %vm399_vm15 = vcmask (%p62_p0), 64512   ;;  %s599_s17 = sshll.u32 (%p62_p0), %s1144_s11, 4  ;;  %s786_s18 = smov (%p62_p0), 128   ;;  %s600_s17 = int_to_ptr.hbm [resolvable:$true] %s599_s17 }
   0xd   : > { %178 = vmatpush.msra.mxu2 %v126_v6  ;;  %198 = vmatpush.msra.mxu3 %v127_v7  ;;  %v119_v17 = vld [vmem:[#allocation3 + $0x178] sm:$0xff]  ;;  %v121_v18 = vld [vmem:[#allocation3 + $0x188] sm:$0xff]  ;;  %v120_v19 = vld [vmem:[#allocation3 + $0x180] sm:$0xff] }
   0xe   : > { %158 = vmatpush.msra.mxu1 %v125_v14  ;;  %v114_v20 = vld [vmem:[#allocation3 + $0x150] sm:$0xff]  ;;  %v115_v21 = vld [vmem:[#allocation3 + $0x158] sm:$0xff]  ;;  %138 = vmatpush.msra.mxu0 %v124_v15  ;;  %v117_v22 = vld [vmem:[#allocation3 + $0x168] sm:$0xff] }
   0xf   : > { %179 = vmatpush.msra.mxu2 %v122_v11  ;;  %199 = vmatpush.msra.mxu3 %v123_v12  ;;  %v116_v23 = vld [vmem:[#allocation3 + $0x160] sm:$0xff]  ;;  %v110_v24 = vld [vmem:[#allocation3 + $0x130] sm:$0xff]  ;;  %v111_v25 = vld [vmem:[#allocation3 + $0x138] sm:$0xff] }
  0x10   : > { %159 = vmatpush.msra.mxu1 %v121_v18  ;;  %139 = vmatpush.msra.mxu0 %v120_v19  ;;  %v113_v26 = vld [vmem:[#allocation3 + $0x148] sm:$0xff]  ;;  %v112_v27 = vld [vmem:[#allocation3 + $0x140] sm:$0xff]  ;;  %v106_v28 = vld [vmem:[#allocation3 + $0x110] sm:$0xff] }
  0x11   : > { %180 = vmatpush.msra.mxu2 %v118_v16  ;;  %200 = vmatpush.msra.mxu3 %v119_v17  ;;  %v107_v29 = vld [vmem:[#allocation3 + $0x118] sm:$0xff]  ;;  %v109_v30 = vld [vmem:[#allocation3 + $0x128] sm:$0xff]  ;;  %v108_v31 = vld [vmem:[#allocation3 + $0x120] sm:$0xff] }
  0x12   : > { %160 = vmatpush.msra.mxu1 %v117_v22  ;;  %140 = vmatpush.msra.mxu0 %v116_v23  ;;  %v102_v32 = vld [vmem:[#allocation3 + $0xf0] sm:$0xff]  ;;  %v103_v33 = vld [vmem:[#allocation3 + $0xf8] sm:$0xff]  ;;  %v105_v34 = vld [vmem:[#allocation3 + $0x108] sm:$0xff] }
  0x13   : > { %181 = vmatpush.msra.mxu2 %v114_v20  ;;  %201 = vmatpush.msra.mxu3 %v115_v21  ;;  %v104_v35 = vld [vmem:[#allocation3 + $0x100] sm:$0xff]  ;;  %v98_v36 = vld [vmem:[#allocation3 + $0xd0] sm:$0xff]  ;;  %v99_v37 = vld [vmem:[#allocation3 + $0xd8] sm:$0xff] }
  0x14   : > { %161 = vmatpush.msra.mxu1 %v113_v26  ;;  %141 = vmatpush.msra.mxu0 %v112_v27  ;;  %v101_v38 = vld [vmem:[#allocation3 + $0xe8] sm:$0xff]  ;;  %v100_v39 = vld [vmem:[#allocation3 + $0xe0] sm:$0xff]  ;;  %v94_v40 = vld [vmem:[#allocation3 + $0xb0] sm:$0xff] }
  0x15   : > { %182 = vmatpush.msra.mxu2 %v110_v24  ;;  %202 = vmatpush.msra.mxu3 %v111_v25  ;;  %v95_v41 = vld [vmem:[#allocation3 + $0xb8] sm:$0xff]  ;;  %v97_v42 = vld [vmem:[#allocation3 + $0xc8] sm:$0xff]  ;;  %v96_v43 = vld [vmem:[#allocation3 + $0xc0] sm:$0xff] }
  0x16   : > { %162 = vmatpush.msra.mxu1 %v109_v30  ;;  %142 = vmatpush.msra.mxu0 %v108_v31  ;;  %v90_v44 = vld [vmem:[#allocation3 + $0x90] sm:$0xff]  ;;  %v91_v45 = vld [vmem:[#allocation3 + $0x98] sm:$0xff]  ;;  %v93_v46 = vld [vmem:[#allocation3 + $0xa8] sm:$0xff] }
  0x17   : > { %183 = vmatpush.msra.mxu2 %v106_v28  ;;  %203 = vmatpush.msra.mxu3 %v107_v29  ;;  %v92_v47 = vld [vmem:[#allocation3 + $0xa0] sm:$0xff]  ;;  %v86_v48 = vld [vmem:[#allocation3 + $0x70] sm:$0xff]  ;;  %v87_v49 = vld [vmem:[#allocation3 + $0x78] sm:$0xff] }
  0x18   : > { %163 = vmatpush.msra.mxu1 %v105_v34  ;;  %143 = vmatpush.msra.mxu0 %v104_v35  ;;  %v89_v50 = vld [vmem:[#allocation3 + $0x88] sm:$0xff]  ;;  %v88_v51 = vld [vmem:[#allocation3 + $0x80] sm:$0xff]  ;;  %v82_v52 = vld [vmem:[#allocation3 + $0x50] sm:$0xff] }
  0x19   : > { %184 = vmatpush.msra.mxu2 %v102_v32  ;;  %204 = vmatpush.msra.mxu3 %v103_v33  ;;  %v83_v53 = vld [vmem:[#allocation3 + $0x58] sm:$0xff]  ;;  %v85_v54 = vld [vmem:[#allocation3 + $0x68] sm:$0xff]  ;;  %v84_v55 = vld [vmem:[#allocation3 + $0x60] sm:$0xff] }
  0x1a   : > { %164 = vmatpush.msra.mxu1 %v101_v38  ;;  %144 = vmatpush.msra.mxu0 %v100_v39  ;;  %v78_v56 = vld [vmem:[#allocation3 + $0x30] sm:$0xff]  ;;  %v79_v57 = vld [vmem:[#allocation3 + $0x38] sm:$0xff]  ;;  %v81_v58 = vld [vmem:[#allocation3 + $0x48] sm:$0xff] }
  0x1b   : > { %185 = vmatpush.msra.mxu2 %v98_v36  ;;  %205 = vmatpush.msra.mxu3 %v99_v37  ;;  %v80_v59 = vld [vmem:[#allocation3 + $0x40] sm:$0xff]  ;;  %v74_v60 = vld [vmem:[#allocation3 + $0x10] sm:$0xff]  ;;  %v75_v61 = vld [vmem:[#allocation3 + $0x18] sm:$0xff] }
  0x1c   : > { %165 = vmatpush.msra.mxu1 %v97_v42  ;;  %145 = vmatpush.msra.mxu0 %v96_v43  ;;  %v77_v62 = vld [vmem:[#allocation3 + $0x28] sm:$0xff]  ;;  %v76_v63 = vld [vmem:[#allocation3 + $0x20] sm:$0xff]  ;;  %v71_v12 = vld [vmem:[%s70_s20] sm:$0xff] }
  0x1d   : > { %186 = vmatpush.msra.mxu2 %v94_v40  ;;  %206 = vmatpush.msra.mxu3 %v95_v41  ;;  %v73_v2 = vld [vmem:[#allocation3 + $0x8] sm:$0xff]  ;;  %v72_v3 = vld [vmem:[#allocation3] sm:$0xff] }
  0x1e   : > { %166 = vmatpush.msra.mxu1 %v93_v46  ;;  %146 = vmatpush.msra.mxu0 %v92_v47 }
  0x1f   : > { %187 = vmatpush.msra.mxu2 %v90_v44  ;;  %207 = vmatpush.msra.mxu3 %v91_v45 }
  0x20   : > { %167 = vmatpush.msra.mxu1 %v89_v50  ;;  %147 = vmatpush.msra.mxu0 %v88_v51 }
  0x21   : > { %188 = vmatpush.msra.mxu2 %v86_v48  ;;  %208 = vmatpush.msra.mxu3 %v87_v49 }
  0x22   : > { %168 = vmatpush.msra.mxu1 %v85_v54  ;;  %148 = vmatpush.msra.mxu0 %v84_v55 }
  0x23   : > { %189 = vmatpush.msra.mxu2 %v82_v52  ;;  %209 = vmatpush.msra.mxu3 %v83_v53 }
  0x24   : > { %169 = vmatpush.msra.mxu1 %v81_v58  ;;  %149 = vmatpush.msra.mxu0 %v80_v59 }
  0x25   : > { %190 = vmatpush.msra.mxu2 %v78_v56  ;;  %210 = vmatpush.msra.mxu3 %v79_v57 }
  0x26   : > { %170 = vmatpush.msra.mxu1 %v77_v62  ;;  %150 = vmatpush.msra.mxu0 %v76_v63  ;;  %v327_v63 = vld [vmem:[%s1139_s6 + $0x78] sm:$0xff] (%p62_p0) }
  0x27   : > { %191 = vmatpush.msra.mxu2 %v74_v60  ;;  %211 = vmatpush.msra.mxu3 %v75_v61 }
  0x28   : > { %192 = vmatmul.f32.vlgmr.msra.gmra.mxu2 %v776_v0  ;;  %212 = vmatmul.f32.vlgmr.msra.gmra.mxu3 %v776_v0 }
  0x29   : > { %171 = vmatpush.msra.mxu1 %v73_v2  ;;  %151 = vmatpush.msra.mxu0 %v72_v3  ;;  %v326_v2 = vld [vmem:[%s1139_s6 + $0x70] sm:$0xff] (%p62_p0)  ;;  %v324_v3 = vld [vmem:[%s1139_s6 + $0x60] sm:$0xff] (%p62_p0) }
  0x2a   : > { %172 = vmatmul.f32.vlgmr.msra.gmra.mxu1 %v776_v0  ;;  %152 = vmatmul.f32.vlgmr.msra.gmra.mxu0 %v776_v0 }
  0x2b   :  { %328 = vmatpush.msra.mxu0 (%p62_p0), %v327_v63  ;;  %v489_v63 = vld [vmem:[%s1141_s8 + $0x28] sm:$0xff] (%p62_p0) }
  0x2d   :  { %329 = vmatpush.msra.mxu0 (%p62_p0), %v326_v2  ;;  %v472_v2 = vld [vmem:[%s1140_s7 + $0x20] sm:$0xff] (%p62_p0) }
  0xa7   : > { %v173_v4 = vpop.f32.mrf.mxu1  ;;  %v153_v5 = vpop.f32.mrf.mxu0 }
  0xa8   : > { %v220_v6 = vrot.slane %v173_v4, 6  ;;  %v323_v4 = vld [vmem:[%s1139_s6 + $0x58] sm:$0xff] (%p62_p0) }
  0xaa   : > { %v224_v11 = vsel %vm223_vm0, %v153_v5, %v220_v6  ;;  %v322_v5 = vld [vmem:[%s1139_s6 + $0x50] sm:$0xff] (%p62_p0)  ;;  %v310_v6 = vld [vmem:[%s1137_s4] sm:$0xff] (%p62_p0) }
  0xab   : > { %v193_v7 = vpop.f32.mrf.mxu2  ;;  %v213_v8 = vpop.f32.mrf.mxu3  ;;  %374 = vmatpush.xpose.msra.mxu1 (%p62_p0), %v310_v6 }
  0xac   : > { %v221_v9 = vrot.slane %v193_v7, 4  ;;  %v222_v10 = vrot.slane %v213_v8, 2  ;;  %v321_v7 = vld [vmem:[%s1139_s6 + $0x48] sm:$0xff] (%p62_p0)  ;;  %v320_v8 = vld [vmem:[%s1139_s6 + $0x40] sm:$0xff] (%p62_p0) }
  0xae   : > { %v226_v13 = vsel %vm225_vm1, %v221_v9, %v222_v10  ;;  %v319_v9 = vld [vmem:[%s1139_s6 + $0x38] sm:$0xff] (%p62_p0)  ;;  %v318_v10 = vld [vmem:[%s1139_s6 + $0x30] sm:$0xff] (%p62_p0) }
  0xaf   : > { %v228_v14 = vsel %vm227_vm2, %v224_v11, %v226_v13  ;;  %v317_v11 = vld [vmem:[%s1139_s6 + $0x28] sm:$0xff] (%p62_p0)  ;;  %v315_v13 = vld [vmem:[%s1139_s6 + $0x18] sm:$0xff] (%p62_p0) }
  0xb0   : > { %v230_v0 = vadd.f32 %v228_v14, %v71_v12  ;;  %v316_v12 = vld [vmem:[%s1139_s6 + $0x20] sm:$0xff] (%p62_p0)  ;;  %v314_v14 = vld [vmem:[%s1139_s6 + $0x10] sm:$0xff] (%p62_p0) }
  0xb2   : > { %v638_v15 = vmul.f32 -1.442695, %v230_v0  ;;  %v251_v16 = vrot.slane %v230_v0, 2  ;;  %v275_v17 = vrot.slane %v230_v0, 6  ;;  %v272_v30 = vrot.slane %v230_v0, 4 }
  0xb4   : > { %675 = vpow2.f32 %v638_v15  ;;  %v639_v18 = vmul.f32 -1.442695, %v251_v16  ;;  %v640_v19 = vmul.f32 -1.442695, %v275_v17  ;;  %v312_v15 = vld [vmem:[%s1139_s6] sm:$0xff] (%p62_p0) }
  0xb6   : > { %677 = vpow2.f32 %v639_v18  ;;  %v311_v18 = vld [vmem:[%s1137_s4 + $0x8] sm:$0xff] (%p62_p0) }
  0xb7   : > { %679 = vpow2.f32 %v640_v19  ;;  %394 = vmatpush.xpose.msra.mxu2 (%p62_p0), %v311_v18  ;;  %463 = vmatpush.msra.mxu3 (%p62_p0), %v311_v18  ;;  %v558_v18 = vld [vmem:[%s1142_s9 + $0x50] sm:$0xff] (%p62_p0) }
  0xba   : > { %v676_v20 = vpop.eup %675 }
  0xbb   : > { %v234_v21 = vadd.f32 1.0, %v676_v20 }
  0xbc   : > { %v678_v22 = vpop.eup %677 }
  0xbd   : > { %v680_v23 = vpop.eup %679  ;;  %681 = vrcp.f32 %v234_v21  ;;  %v256_v24 = vadd.f32 1.0, %v678_v22  ;;  %v246_v34 = vand.u32 2147483648, %v234_v21  ;;  %v244_v36 = vand.u32 2147483647, %v234_v21 }
  0xbe   : > { %v280_v25 = vadd.f32 1.0, %v680_v23  ;;  %vm240_vm4 = vweird.f32 %v234_v21 }
  0xbf   : > { %683 = vrcp.f32 %v256_v24  ;;  %v268_v39 = vand.u32 2147483648, %v256_v24  ;;  %v266_v41 = vand.u32 2147483647, %v256_v24  ;;  %v247_v43 = vor.u32 1.1754944e-38, %v246_v34 }
  0xc0   : > { %685 = vrcp.f32 %v280_v25  ;;  %vm245_vm7 = vcmp.eq.f32.partialorder %v244_v36, 8.507059e+37  ;;  %vm262_vm8 = vweird.f32 %v256_v24  ;;  %v292_v56 = vand.u32 2147483648, %v280_v25 }
  0xc1   : > { %687 = vtanh.f32 %v272_v30  ;;  %v269_v47 = vor.u32 1.1754944e-38, %v268_v39  ;;  %vm267_vm10 = vcmp.eq.f32.partialorder %v266_v41, 8.507059e+37  ;;  %vm286_vm12 = vweird.f32 %v280_v25  ;;  %v483_v39 = vld [vmem:[%s1140_s7 + $0x78] sm:$0xff] (%p62_p0) }
  0xc2   : > { %v290_v57 = vand.u32 2147483647, %v280_v25  ;;  %v293_v59 = vor.u32 1.1754944e-38, %v292_v56  ;;  %523 = vmatpush.msrb.mxu2 (%p62_p0), %v483_v39  ;;  %v499_v41 = vld [vmem:[%s1141_s8 + $0x78] sm:$0xff] (%p62_p0)  ;;  %v693_v39 = vld [vmem:[%s1143_s10] ss:$0 sm:$0xff] (%p62_p0) }
  0xc3   : > { %v682_v26 = vpop.eup %681  ;;  %500 = vmatpush.msrb.mxu1 (%p62_p0), %v499_v41  ;;  %v475_v56 = vld [vmem:[%s1140_s7 + $0x38] sm:$0xff] (%p62_p0) }
  0xc4   : > { %v236_v27 = vmul.f32 %v682_v26, %v234_v21  ;;  %vm241_vm3 = vweird.f32 %v682_v26  ;;  %vm291_vm14 = vcmp.eq.f32.partialorder %v290_v57, 8.507059e+37  ;;  %v691_v21 = vld [vmem:[%s1138_s5] ss:$0 sm:$0xff] (%p62_p0) }
  0xc5   : > { %v684_v28 = vpop.eup %683  ;;  %vm242_vm5 = vmor %vm240_vm4, %vm241_vm3 }
  0xc6   : > { %v237_v29 = vsub.f32 1.0, %v236_v27  ;;  %v686_v31 = vpop.eup %685  ;;  %v258_v32 = vmul.f32 %v684_v28, %v256_v24  ;;  %vm263_vm6 = vweird.f32 %v684_v28 }
  0xc7   : > { %v282_v35 = vmul.f32 %v686_v31, %v280_v25  ;;  %vm264_vm9 = vmor %vm262_vm8, %vm263_vm6  ;;  %v688_v49 = vpop.eup %687  ;;  %vm287_vm11 = vweird.f32 %v686_v31  ;;  %v692_v25 = vld [vmem:[%s1138_s5 + $0x1] ss:$0 sm:$0xff] (%p62_p0) }
  0xc8   : > { %v238_v33 = vmul.f32 %v682_v26, %v237_v29  ;;  %v259_v37 = vsub.f32 1.0, %v258_v32  ;;  %vm288_vm13 = vmor %vm286_vm12, %vm287_vm11 }
  0xc9   : > { %v283_v44 = vsub.f32 1.0, %v282_v35 }
  0xca   : > { %v239_v38 = vadd.f32 %v682_v26, %v238_v33  ;;  %v260_v40 = vmul.f32 %v684_v28, %v259_v37 }
  0xcb   : > { %v284_v51 = vmul.f32 %v686_v31, %v283_v44  ;;  %v497_v44 = vld [vmem:[%s1141_s8 + $0x68] sm:$0xff] (%p62_p0) }
  0xcc   : > { %v243_v42 = vsel %vm242_vm5, %v682_v26, %v239_v38  ;;  %v261_v45 = vadd.f32 %v684_v28, %v260_v40  ;;  %v482_v40 = vld [vmem:[%s1140_s7 + $0x70] sm:$0xff] (%p62_p0) }
  0xcd   : > { %v248_v46 = vsel %vm245_vm7, %v247_v43, %v243_v42  ;;  %v285_v55 = vadd.f32 %v686_v31, %v284_v51  ;;  %v498_v42 = vld [vmem:[%s1141_s8 + $0x70] sm:$0xff] (%p62_p0)  ;;  %v481_v43 = vld [vmem:[%s1140_s7 + $0x68] sm:$0xff] (%p62_p0)  ;;  %524 = vmatpush.msrb.mxu2 (%p62_p0), %v482_v40 }
  0xce   : > { %v265_v48 = vsel %vm264_vm9, %v684_v28, %v261_v45  ;;  %v297_v53 = vmul.f32 %v688_v49, %v248_v46  ;;  %v480_v45 = vld [vmem:[%s1140_s7 + $0x60] sm:$0xff] (%p62_p0)  ;;  %501 = vmatpush.msrb.mxu1 (%p62_p0), %v498_v42  ;;  %v494_v51 = vld [vmem:[%s1141_s8 + $0x50] sm:$0xff] (%p62_p0) }
  0xcf   : > { %v270_v50 = vsel %vm267_vm10, %v269_v47, %v265_v48  ;;  %v289_v58 = vsel %vm288_vm13, %v686_v31, %v285_v55  ;;  %525 = vmatpush.msrb.mxu2 (%p62_p0), %v481_v43  ;;  %v496_v46 = vld [vmem:[%s1141_s8 + $0x60] sm:$0xff] (%p62_p0)  ;;  %v479_v47 = vld [vmem:[%s1140_s7 + $0x58] sm:$0xff] (%p62_p0) }
  0xd0   : > { %v296_v52 = vmul.f32 %v772_v1, %v270_v50  ;;  %v294_v61 = vsel %vm291_vm14, %v293_v59, %v289_v58  ;;  %502 = vmatpush.msrb.mxu1 (%p62_p0), %v497_v44  ;;  %v495_v48 = vld [vmem:[%s1141_s8 + $0x58] sm:$0xff] (%p62_p0)  ;;  %v478_v50 = vld [vmem:[%s1140_s7 + $0x50] sm:$0xff] (%p62_p0)  ;;  %v492_v55 = vld [vmem:[%s1141_s8 + $0x40] sm:$0xff] (%p62_p0) }
  0xd1   :  { %526 = vmatpush.msrb.mxu2 (%p62_p0), %v480_v45  ;;  %v491_v58 = vld [vmem:[%s1141_s8 + $0x38] sm:$0xff] (%p62_p0) }
  0xd2   : > { %v298_v54 = vadd.f32 %v297_v53, %v296_v52   ;;  %503 = vmatpush.msrb.mxu1 (%p62_p0), %v496_v46  ;;  %v477_v52 = vld [vmem:[%s1140_s7 + $0x48] sm:$0xff] (%p62_p0) }
  0xd3   :  { %527 = vmatpush.msrb.mxu2 (%p62_p0), %v479_v47  ;;  %v493_v53 = vld [vmem:[%s1141_s8 + $0x48] sm:$0xff] (%p62_p0) }
  0xd4   : > { %689 = vtanh.f32 %v298_v54  ;;  %v1147_v1 = vmov %v298_v54  ;;  %307 = vst [vmem:[%s1146_s13] sm:$0x3] (%p62_p0), %v298_v54  ;;  %504 = vmatpush.msrb.mxu1 (%p62_p0), %v495_v48  ;;  %v476_v54 = vld [vmem:[%s1140_s7 + $0x40] sm:$0xff] (%p62_p0)  ;;  %s787_s13 = smov (%p62_p0), 8  }
  0xd5   :  { %v325_v1 = vld [vmem:[%s1139_s6 + $0x68] sm:$0xff] (%p62_p0)  ;;  %528 = vmatpush.msrb.mxu2 (%p62_p0), %v478_v50 }
  0xd6   :  { %330 = vmatpush.msra.mxu0 (%p62_p0), %v325_v1  ;;  %505 = vmatpush.msrb.mxu1 (%p62_p0), %v494_v51  ;;  %v488_v1 = vld [vmem:[%s1141_s8 + $0x20] sm:$0xff] (%p62_p0) }
  0xd7   :  { %529 = vmatpush.msrb.mxu2 (%p62_p0), %v477_v52 }
  0xd8   :  { %331 = vmatpush.msra.mxu0 (%p62_p0), %v324_v3  ;;  %506 = vmatpush.msrb.mxu1 (%p62_p0), %v493_v53 }
  0xd9   :  { %530 = vmatpush.msrb.mxu2 (%p62_p0), %v476_v54 }
  0xda   : > { %v690_v60 = vpop.eup %689  ;;  %64 = sbr.rel (!%p62_p0) target bundleno = 8 (0x8), region = 94  ;;  %332 = vmatpush.msra.mxu0 (%p62_p0), %v323_v4  ;;  %507 = vmatpush.msrb.mxu1 (%p62_p0), %v492_v55  ;;  %v471_v4 = vld [vmem:[%s1140_s7 + $0x18] sm:$0xff] (%p62_p0) }
  0xdb   : > { %v300_v62 = vmul.f32 %v690_v60, %v294_v61   ;;  %v474_v60 = vld [vmem:[%s1140_s7 + $0x30] sm:$0xff] (%p62_p0)  ;;  %531 = vmatpush.msrb.mxu2 (%p62_p0), %v475_v56 }
  0xdc   :  { %333 = vmatpush.msra.mxu0 (%p62_p0), %v322_v5  ;;  %v490_v61 = vld [vmem:[%s1141_s8 + $0x30] sm:$0xff] (%p62_p0)  ;;  %508 = vmatpush.msrb.mxu1 (%p62_p0), %v491_v58 }
  0xdd   : > { %302 = vst [vmem:[%s301_s21] sm:$0x1] %v300_v62  ;;  %v1148_v0 = vmov %v300_v62  ;;  %532 = vmatpush.msrb.mxu2 (%p62_p0), %v474_v60  ;;  %v470_v5 = vld [vmem:[%s1140_s7 + $0x10] sm:$0xff] (%p62_p0) }
  0xde   : > { %641 = vst [vmem:[%s301_s21 + $0x7] sm:$0x2] %v300_v62  ;;  %334 = vmatpush.msra.mxu0 (%p62_p0), %v321_v7  ;;  %v313_v0 = vld [vmem:[%s1139_s6 + $0x8] sm:$0xff] (%p62_p0)  ;;  %509 = vmatpush.msrb.mxu1 (%p62_p0), %v490_v61 }
  0xdf   :  { %306 = vst [vmem:[%s1145_s12] sm:$0x3] %v300_v62  ;;  %v473_v62 = vld [vmem:[%s1140_s7 + $0x28] sm:$0xff] }
  0xe0   :  { %335 = vmatpush.msra.mxu0 %v320_v8  ;;  %533 = vmatpush.msrb.mxu2 %v473_v62 }
  0xe1   :  { %510 = vmatpush.msrb.mxu1 %v489_v63 }
  0xe2   :  { %336 = vmatpush.msra.mxu0 %v319_v9  ;;  %534 = vmatpush.msrb.mxu2 %v472_v2  ;;  %v487_v9 = vld [vmem:[%s1141_s8 + $0x18] sm:$0xff] }
  0xe3   :  { %511 = vmatpush.msrb.mxu1 %v488_v1 }
  0xe4   :  { %337 = vmatpush.msra.mxu0 %v318_v10  ;;  %535 = vmatpush.msrb.mxu2 %v471_v4  ;;  %v468_v10 = vld [vmem:[%s1140_s7] sm:$0xff] }
  0xe5   :  { %v956_v16 = vld [vmem:[#allocation2] sm:$0xff]  ;;  %v959_v17 = vld [vmem:[#allocation2 + $0x8] sm:$0xff]  ;;  %512 = vmatpush.msrb.mxu1 %v487_v9 }
  0xe6   :  { %338 = vmatpush.msra.mxu0 %v317_v11  ;;  %536 = vmatpush.msrb.mxu2 %v470_v5  ;;  %v486_v11 = vld [vmem:[%s1141_s8 + $0x10] sm:$0xff] }
  0xe7   :  { %513 = vmatpush.msrb.mxu1 %v486_v11 }
  0xe8   :  { %339 = vmatpush.msra.mxu0 %v316_v12  ;;  %v485_v12 = vld [vmem:[%s1141_s8 + $0x8] sm:$0xff] }
  0xe9   :  { %514 = vmatpush.msrb.mxu1 %v485_v12 }
  0xea   :  { %340 = vmatpush.msra.mxu0 %v315_v13  ;;  %v484_v13 = vld [vmem:[%s1141_s8] sm:$0xff] }
  0xeb   :  { %515 = vmatpush.msrb.mxu1 %v484_v13 }
  0xec   :  { %341 = vmatpush.msra.mxu0 %v314_v14  ;;  %v563_v14 = vld [vmem:[%s1142_s9 + $0x78] sm:$0xff] }
  0xed   :  { %568 = vmatpush.msrb.mxu3 %v563_v14 }
  0xee   :  { %342 = vmatpush.msra.mxu0 %v313_v0  ;;  %v562_v0 = vld [vmem:[%s1142_s9 + $0x70] sm:$0xff] }
  0xef   :  { %569 = vmatpush.msrb.mxu3 %v562_v0 }
  0xf0   :  { %343 = vmatpush.msra.mxu0 %v312_v15  ;;  %v561_v15 = vld [vmem:[%s1142_s9 + $0x68] sm:$0xff] }
  0xf1   :  { %344 = vmatmul.f32.vlgmr.msra.gmra.mxu0 %v956_v16  ;;  %570 = vmatpush.msrb.mxu3 %v561_v15 }
  0xf2   :  { %440 = vmatpush.msrb.mxu0 %v310_v6  ;;  %v469_v6 = vld [vmem:[%s1140_s7 + $0x8] sm:$0xff] }
  0xf3   :  { %537 = vmatpush.msrb.mxu2 %v469_v6 }
  0xf5   :  { %538 = vmatpush.msrb.mxu2 %v468_v10 }
  0xf9   :  { %347 = vmatmul.f32.gmra.mxu0 %v959_v17 }
 0x16e   :  { %v345_v19 = vpop.f32.mrf.mxu0 }
 0x16f   :  { %375 = vmatmul.f32.vlgmr.msra.gmra.mxu1 %v345_v19  ;;  %v557_v19 = vld [vmem:[%s1142_s9 + $0x48] sm:$0xff] }
 0x176   :  { %v348_v20 = vpop.f32.mrf.mxu0 }
 0x177   :  { %395 = vmatmul.f32.vlgmr.msra.gmra.mxu2 %v348_v20  ;;  %516 = vmatmul.f32.vlgmr.msrb.gmra.mxu1 %v956_v16  ;;  %v560_v16 = vld [vmem:[%s1142_s9 + $0x60] sm:$0xff] }
 0x178   :  { %571 = vmatpush.msrb.mxu3 %v560_v16 }
 0x17f   :  { %519 = vmatmul.f32.gmra.mxu1 %v959_v17  ;;  %v559_v17 = vld [vmem:[%s1142_s9 + $0x58] sm:$0xff] }
 0x180   :  { %572 = vmatpush.msrb.mxu3 %v559_v17 }
 0x182   :  { %573 = vmatpush.msrb.mxu3 %v558_v18 }
 0x184   :  { %574 = vmatpush.msrb.mxu3 %v557_v19 }
 0x1ec   :  { %v376_v22 = vpop.f32.mrf.mxu1 }
 0x1ed   :  { %v377_v23 = vadd.f32 %v691_v21, %v376_v22  ;;  %v556_v21 = vld [vmem:[%s1142_s9 + $0x40] sm:$0xff]  ;;  %v555_v22 = vld [vmem:[%s1142_s9 + $0x38] sm:$0xff] }
 0x1ee   :  { %575 = vmatpush.msrb.mxu3 %v556_v21 }
 0x1ef   :  { %v400_v24 = vsel %vm399_vm15, %v377_v23, -inf }
 0x1f0   :  { %401 = vmax.xlane.f32.xlu0 %v400_v24  ;;  %576 = vmatpush.msrb.mxu3 %v555_v22  ;;  %v553_v24 = vld [vmem:[%s1142_s9 + $0x28] sm:$0xff] }
 0x1fa   :  { %v396_v26 = vpop.f32.mrf.mxu2 }
 0x1fb   :  { %v397_v27 = vadd.f32 %v692_v25, %v396_v26  ;;  %v552_v26 = vld [vmem:[%s1142_s9 + $0x20] sm:$0xff] }
 0x1fd   :  { %v403_v28 = vsel %vm399_vm15, %v397_v27, -inf }
 0x1fe   :  { %404 = vmax.xlane.f32.xlu0 %v403_v28  ;;  %v550_v28 = vld [vmem:[%s1142_s9 + $0x10] sm:$0xff] }
 0x263   :  { %v402_v29 = vpop.xlane.xlu0 %401 }
 0x264   :  { %v406_v30 = vsub.f32 %v377_v23, %v402_v29  ;;  %v554_v23 = vld [vmem:[%s1142_s9 + $0x30] sm:$0xff]  ;;  %v549_v29 = vld [vmem:[%s1142_s9 + $0x8] sm:$0xff] }
 0x265   :  { %577 = vmatpush.msrb.mxu3 %v554_v23 }
 0x266   :  { %v408_v31 = vmul.f32 1.442695, %v406_v30  ;;  %v548_v30 = vld [vmem:[%s1142_s9] sm:$0xff] }
 0x267   :  { %578 = vmatpush.msrb.mxu3 %v553_v24 }
 0x268   :  { %694 = vpow2.f32 %v408_v31  ;;  %v517_v31 = vpop.f32.mrf.mxu1 }
 0x269   :  { %579 = vmatpush.msrb.mxu3 %v552_v26 }
 0x26e   :  { %v695_v32 = vpop.eup %694 }
 0x26f   :  { %v412_v33 = vsel %vm399_vm15, %v695_v32, 0.0 }
 0x270   :  { %413 = vadd.xlane.f32.xlu1 %v412_v33 }
 0x271   :  { %v405_v34 = vpop.xlane.xlu0 %404 }
 0x272   :  { %v407_v35 = vsub.f32 %v397_v27, %v405_v34  ;;  %v551_v27 = vld [vmem:[%s1142_s9 + $0x18] sm:$0xff]  ;;  %s785_s9 = smov [#allocation6]  }
 0x273   :  { %580 = vmatpush.msrb.mxu3 %v551_v27  ;;  %s597_s8 = sshll.u32 %s785_s9, 4  ;;  %s598_s8 = int_to_ptr.vmem [resolvable:$true] %s597_s8 }
 0x274   :  { %v410_v36 = vmul.f32 1.442695, %v407_v35  ;;  %v520_v35 = vpop.f32.mrf.mxu1 }
 0x275   :  { %581 = vmatpush.msrb.mxu3 %v550_v28 }
 0x276   :  { %696 = vpow2.f32 %v410_v36 }
 0x277   :  { %582 = vmatpush.msrb.mxu3 %v549_v29 }
 0x279   :  { %583 = vmatpush.msrb.mxu3 %v548_v30 }
 0x27c   :  { %v974_v37 = vpop.eup %696 }
 0x27d   :  { %v415_v38 = vsel %vm399_vm15, %v974_v37, 0.0 }
 0x27e   :  { %416 = vadd.xlane.f32.xlu1 %v415_v38 }
 0x2e3   :  { %v414_v49 = vpop.xlane.xlu1 %413 }
 0x2e4   :  { %698 = vrcp.f32 %v414_v49 }
 0x2ea   :  { %v699_v57 = vpop.eup %698 }
 0x2eb   :  { %v420_v59 = vmul.f32 %v699_v57, %v695_v32 }
 0x2ed   :  { %642 = vmatmul.msk.f32.vlgmr.msrb.gmra.mxu0 %vm399_vm15, %v420_v59 }
 0x2f1   :  { %v417_v3 = vpop.xlane.xlu1 %416 }
 0x2f2   :  { %700 = vrcp.f32 %v417_v3 }
 0x2f8   :  { %v701_v7 = vpop.eup %700 }
 0x2f9   :  { %v421_v8 = vmul.f32 %v701_v7, %v974_v37 }
 0x2fb   :  { %643 = vmatmul.msk.f32.vlgmr.msra.gmra.mxu3 %vm399_vm15, %v421_v8 }
 0x36a   :  { %v442_v20 = vpop.f32.mrf.mxu0 }
 0x36b   :  { %539 = vmatmul.f32.vlgmr.msrb.gmra.mxu2 %v442_v20 }
 0x37e   :  { %v465_v25 = vpop.f32.mrf.mxu3 }
 0x37f   :  { %542 = vmatmul.f32.gmra.mxu2 %v465_v25 }
 0x3ee   :  { %v540_v32 = vpop.f32.mrf.mxu2 }
 0x3ef   :  { %v541_v33 = vadd.f32 %v540_v32, %v517_v31 }
 0x3f1   :  { %702 = vtanh.f32 %v541_v33 }
 0x3f7   :  { %v703_v34 = vpop.eup %702 }
 0x3f8   :  { %584 = vmatmul.f32.vlgmr.msrb.gmra.mxu3 %v703_v34 }
 0x402   :  { %v543_v36 = vpop.f32.mrf.mxu2 }
 0x403   :  { %v544_v37 = vadd.f32 %v543_v36, %v520_v35 }
 0x405   :  { %704 = vtanh.f32 %v544_v37 }
 0x40b   :  { %v705_v38 = vpop.eup %704 }
 0x40c   :  { %587 = vmatmul.f32.gmra.mxu3 %v705_v38 }
 0x47b   :  { %v585_v40 = vpop.f32.mrf.mxu3 }
 0x47c   :  { %v586_v41 = vadd.f32 %v693_v39, %v585_v40 }
 0x47e   :  { %591 = vst [vmem:[#allocation6] sm:$0xff] %v586_v41 }
 0x48f   :  { %v588_v42 = vpop.f32.mrf.mxu3 }
 0x490   :  { %v589_v43 = vadd.f32 %v693_v39, %v588_v42 }
 0x492   :  { %592 = vst [vmem:[#allocation6 + $0x8] sm:$0xff] %v589_v43 }
 0x493   :  { %605 = dma.vmem_to_hbm [thread:$0]  %s598_s8, 256, %s600_s17, [#allocation5], %s786_s18, %s786_s18, %s787_s13  }
 0x494   :  { %768 = dma.done.wait [#allocation5], 256  }
 0x495   :  { %769 = vsyncadd [#allocation5], 4294967040 }
 0x496   :  { %618 = vsyncpa [#allocation4], 1 }
 0x497   :  { %619 = vsyncpa [#allocation5], 1 }

</bundles_post_ra>
